<compile_context>
chip_gen: v5e
topology: v5e:2x2
jax: 0.10.0
libtpu: 0.0.40
codegen_flags: <defaults>
</compile_context>

<pallas_src>
import functools

import numpy as np
import jax
import jax.numpy as jnp
from jax.experimental import pallas as pl
from jax.experimental.pallas import tpu as pltpu


# ----------------------------------------------------------------------------
# Trace-time constants (pure numpy, embedded in the executable)
# ----------------------------------------------------------------------------
def _interp_matrix_np(n_in, n_out):
    """1-D interpolation matrix of nn.UpsamplingBilinear2d (align_corners=True)."""
    A = np.zeros((n_out, n_in), np.float32)
    if n_in == 1:
        A[:, 0] = 1.0
        return A
    src = np.arange(n_out, dtype=np.float64) * (n_in - 1) / (n_out - 1)
    i0 = np.clip(np.floor(src).astype(np.int64), 0, n_in - 1)
    i1 = np.minimum(i0 + 1, n_in - 1)
    frac = (src - i0).astype(np.float32)
    A[np.arange(n_out), i0] += 1.0 - frac
    A[np.arange(n_out), i1] += frac
    return A


def _tap_masks_np(H, W):
    """(9, 1, H*W) float masks: 1 where the shifted pixel is inside the image."""
    HW = H * W
    hh, ww = np.divmod(np.arange(HW), W)
    m = np.zeros((9, 1, HW), np.float32)
    t = 0
    for oy in (-1, 0, 1):
        for ox in (-1, 0, 1):
            valid = ((hh + oy >= 0) & (hh + oy < H) &
                     (ww + ox >= 0) & (ww + ox < W))
            m[t, 0, :] = valid.astype(np.float32)
            t += 1
    return m


def _tensorcores_per_device():
    """Best-effort: TensorCores exposed by one JAX device (megacore / v7x -> 2)."""
    try:
        kind = jax.devices()[0].device_kind.lower()
    except Exception:
        return 1
    for tag in ("v7", "7x", "v4", "v5p"):
        if tag in kind:
            return 2
    return 1


# ----------------------------------------------------------------------------
# In-kernel fused Conv3x3(pad=1) + InstanceNorm2d(affine=False) + ReLU6
# operating on NB lane-stacked samples:  x is (Cin, NB*HW).
# ----------------------------------------------------------------------------
def _conv3x3_in_relu6(x, w_mat, masks_ref, *, W, NB, HW):
    """x: (Cin, NB*HW) f32, lane order = (sample, h, w).
    w_mat: (Cout, 9*Cin) f32, tap-major repacked PyTorch OIHW weight.
    masks_ref: (9, Cmask, NB*HW) boundary masks, pre-replicated over sublanes.
    Returns (Cout, NB*HW) f32."""
    C, L = x.shape                                   # L = NB*HW

    cols = []
    t = 0
    for oy in (-1, 0, 1):
        for ox in (-1, 0, 1):
            s = oy * W + ox                          # flat-index offset of this tap
            if s == 0:
                cols.append(x)                       # center tap: no shift, no mask
            else:
                # shifted[:, p] = x[:, (p + s) mod L]  (XLU lane rotation).
                # Any wrap across a row / sample boundary corresponds to an
                # out-of-image tap and is zeroed by the mask.
                shifted = pltpu.roll(x, shift=(-s) % L, axis=1)
                cols.append(shifted * masks_ref[t][:C, :])
            t += 1
    im2col = jnp.concatenate(cols, axis=0)           # (9*Cin, NB*HW)

    # Single MXU matmul, K = 9*Cin (do NOT split into per-tap matmuls).
    y = jnp.dot(w_mat, im2col, preferred_element_type=jnp.float32)  # (Cout, L)

    # InstanceNorm2d(affine=False): per-sample, per-channel over HW,
    # biased variance, eps=1e-5.  var = E[y^2] - mean^2 so the two cross-lane
    # reductions are independent and can interleave in the XLU FIFO.
    inv_hw = 1.0 / HW
    outs = []
    for n in range(NB):
        blk = y[:, n * HW:(n + 1) * HW]              # aligned 256-lane block
        s1 = jnp.sum(blk, axis=1, keepdims=True)
        s2 = jnp.sum(blk * blk, axis=1, keepdims=True)
        mean = s1 * inv_hw
        var = s2 * inv_hw - mean * mean
        scale = jax.lax.rsqrt(var + 1e-5)
        outs.append(jnp.clip((blk - mean) * scale, 0.0, 6.0))   # ReLU6
    return outs[0] if NB == 1 else jnp.concatenate(outs, axis=-1)


# ----------------------------------------------------------------------------
# Fused kernel: upsample + concat + Double_CBR for NB samples per grid step
# ----------------------------------------------------------------------------
def _unet_skip_up_kernel(enc_ref, fu_ref, ut_ref, w1_ref, w2_ref, masks_ref,
                         o_ref, *, H, W, NB):
    HW = H * W
    f32 = jnp.float32

    # Encoder features: lane-stack the NB samples -> (C_enc, NB*HW).
    enc_blocks = [enc_ref[n].astype(f32) for n in range(NB)]
    x_enc = enc_blocks[0] if NB == 1 else jnp.concatenate(enc_blocks, axis=-1)

    # Bilinear x2 upsample (align_corners=True) as a matmul with the
    # precomputed Kronecker interpolation operator, per sample, lane-stacked.
    ut = ut_ref[...].astype(f32)                     # (Hi*Wi, H*W)
    up_blocks = [jnp.dot(fu_ref[n].astype(f32), ut, preferred_element_type=f32)
                 for n in range(NB)]
    x_up = up_blocks[0] if NB == 1 else jnp.concatenate(up_blocks, axis=-1)

    x = jnp.concatenate([x_enc, x_up], axis=0)       # torch.cat(dim=1) -> (Cin, NB*HW)

    h = _conv3x3_in_relu6(x, w1_ref[...], masks_ref, W=W, NB=NB, HW=HW)  # stage 1 (VMEM)
    h = _conv3x3_in_relu6(h, w2_ref[...], masks_ref, W=W, NB=NB, HW=HW)  # stage 2

    for n in range(NB):                              # lane-dense (Cout, 256) stores
        o_ref[n] = h[:, n * HW:(n + 1) * HW].astype(o_ref.dtype)


# ----------------------------------------------------------------------------
# Wrapper: PyTorch-convention NCHW / OIHW in, NCHW out.  Activation path uses
# only free reshapes; all real work happens in the single pallas_call.
# ----------------------------------------------------------------------------
@jax.jit
def unet_skip_up(feat_encoder, feat_up, w1, b1, w2, b2):
    """feat_encoder: (N, C_enc, H, W); feat_up: (N, C_up, H/2, W/2) -- NCHW.
    w1: (Cout, Cin, 3, 3), w2: (Cout, Cout, 3, 3) -- PyTorch OIHW weights.
    b1/b2 accepted for API fidelity but skipped: a per-channel bias added right
    before InstanceNorm2d(affine=False) is cancelled exactly by the mean
    subtraction (mathematical no-op)."""
    del b1, b2
    N, C_enc, H, W = feat_encoder.shape
    _, C_up, Hi, Wi = feat_up.shape
    Cout, Cin = w1.shape[0], w1.shape[1]
    assert Cin == C_enc + C_up
    assert (H, W) == (2 * Hi, 2 * Wi)
    HW, HiWi = H * W, Hi * Wi

    # TODO(synk): beyond ~32x32 spatial, replace the dense Kronecker upsample
    # operator (O(HW^2) floats, first thing to blow v7x's 64 MiB VMEM) with
    # separable row/column interpolation matmuls.
    assert HiWi * HW * 4 <= (8 << 20), \
        "dense upsample operator too large; switch to separable interpolation"

    # Grid strategy: one batch-shard per TensorCore on multi-TC chips
    # (v7x / megacore); otherwise (single-TC v5e / v6e) a single grid step with
    # the whole batch folded onto the lane axis.
    tc = _tensorcores_per_device()
    G = tc if (tc > 1 and N % tc == 0) else 1
    NB = N // G

    # Free reshapes (same row-major buffer): NCHW -> (N, C, H*W).
    enc = feat_encoder.reshape(N, C_enc, HW)
    fu = feat_up.reshape(N, C_up, HiWi)

    # Trace-time constants: upsample operator and conv boundary masks
    # (masks pre-replicated over channel sublanes and tiled over the NB
    # lane-stacked samples -- no in-kernel sublane broadcasts).
    ut = jnp.asarray(np.kron(_interp_matrix_np(Hi, H),
                             _interp_matrix_np(Wi, W)).T)          # (Hi*Wi, H*W)
    cmask = max(Cin, Cout)
    masks = jnp.asarray(np.tile(_tap_masks_np(H, W), (1, cmask, NB)))  # (9, cmask, NB*HW)

    # Repack OIHW weights tap-major: column index = (kh*3 + kw) * Cin + ci.
    w1m = jnp.transpose(w1, (0, 2, 3, 1)).reshape(Cout, 9 * Cin)
    w2m = jnp.transpose(w2, (0, 2, 3, 1)).reshape(Cout, 9 * Cout)

    # Note: pl.Buffered(1) on the grid-invariant operands was considered and
    # skipped -- the duplicated constants are ~0.2 MB here, negligible.
    out_flat = pl.pallas_call(
        functools.partial(_unet_skip_up_kernel, H=H, W=W, NB=NB),
        out_shape=jax.ShapeDtypeStruct((N, Cout, HW), feat_encoder.dtype),
        grid=(G,),
        in_specs=[
            pl.BlockSpec((NB, C_enc, HW), lambda g: (g, 0, 0)),
            pl.BlockSpec((NB, C_up, HiWi), lambda g: (g, 0, 0)),
            pl.BlockSpec((HiWi, HW), lambda g: (0, 0)),
            pl.BlockSpec((Cout, 9 * Cin), lambda g: (0, 0)),
            pl.BlockSpec((Cout, 9 * Cout), lambda g: (0, 0)),
            pl.BlockSpec((9, cmask, NB * HW), lambda g: (0, 0, 0)),
        ],
        out_specs=pl.BlockSpec((NB, Cout, HW), lambda g: (g, 0, 0)),
        compiler_params=pltpu.CompilerParams(
            dimension_semantics=("parallel",)),   # v7x: one batch-shard per TC
    )(enc, fu, ut, w1m, w2m, masks)

    # Free reshape back to NCHW.
    return out_flat.reshape(N, Cout, H, W)


# ----------------------------------------------------------------------------
# Pure-JAX reference (for in-script validation of the Pallas kernel)
# ----------------------------------------------------------------------------
def _reference_forward(feat_encoder, feat_up, w1, b1, w2, b2):
    N, C_up, Hi, Wi = feat_up.shape
    H, W = 2 * Hi, 2 * Wi
    Ah = jnp.asarray(_interp_matrix_np(Hi, H))   # (H, Hi)
    Aw = jnp.asarray(_interp_matrix_np(Wi, W))   # (W, Wi)
    up = jnp.einsum('hy,ncyx,wx->nchw', Ah, feat_up, Aw,
                    precision=jax.lax.Precision.HIGHEST)
    x = jnp.concatenate([feat_encoder, up], axis=1)

    def cbr(x, w, b):
        y = jax.lax.conv_general_dilated(
            x, w, window_strides=(1, 1), padding='SAME',
            dimension_numbers=('NCHW', 'OIHW', 'NCHW'),
            precision=jax.lax.Precision.HIGHEST)
        y = y + b[None, :, None, None]
        mean = jnp.mean(y, axis=(2, 3), keepdims=True)
        var = jnp.var(y, axis=(2, 3), keepdims=True)
        y = (y - mean) * jax.lax.rsqrt(var + 1e-5)
        return jnp.clip(y, 0.0, 6.0)

    return cbr(cbr(x, w1, b1), w2, b2)


# ----------------------------------------------------------------------------
# Main
# ----------------------------------------------------------------------------
if __name__ == "__main__":
    # Small shapes consistent with the module:
    #   encoder feature: (2, 4, 16, 16); decoder feature to upsample: (2, 4, 8, 8)
    #   in_channel = 4 + 4 = 8, out_channel = 8
    N, C_enc, H, W = 2, 4, 16, 16
    C_up = 4
    in_channel = C_enc + C_up
    out_channel = 8

    key = jax.random.PRNGKey(0)
    k_enc, k_up, kw1, kb1, kw2, kb2 = jax.random.split(key, 6)

    feat_encoder = jax.random.normal(k_enc, (N, C_enc, H, W), jnp.float32)
    feat_up = jax.random.normal(k_up, (N, C_up, H // 2, W // 2), jnp.float32)

    # PyTorch-convention OIHW conv weights + biases (biases cancel under IN).
    w1 = jax.random.normal(kw1, (out_channel, in_channel, 3, 3), jnp.float32) * 0.1
    b1 = jax.random.normal(kb1, (out_channel,), jnp.float32) * 0.1
    w2 = jax.random.normal(kw2, (out_channel, out_channel, 3, 3), jnp.float32) * 0.1
    b2 = jax.random.normal(kb2, (out_channel,), jnp.float32) * 0.1

    out = unet_skip_up(feat_encoder, feat_up, w1, b1, w2, b2)
    out = jax.block_until_ready(out)

    assert out.shape == (N, out_channel, H, W), out.shape
    assert out.dtype == jnp.float32
    assert bool(jnp.all(jnp.isfinite(out)))

    # Validate against a pure-JAX reference (guards roll sign / masks / IN math).
    ref = _reference_forward(feat_encoder, feat_up, w1, b1, w2, b2)
    max_err = float(jnp.max(jnp.abs(out - ref)))
    assert max_err < 1e-1, f"max abs error vs reference too large: {max_err}"

    print("KERNEL_OK")
</pallas_src>

<mosaic_0001>
module attributes {stable_mosaic.version = 11 : i64} {
  func.func @_unet_skip_up_kernel(%arg0: i32, %arg1: memref<2x4x256xf32, #tpu.memory_space<vmem>>, %arg2: memref<2x4x64xf32, #tpu.memory_space<vmem>>, %arg3: memref<64x256xf32, #tpu.memory_space<vmem>>, %arg4: memref<8x72xf32, #tpu.memory_space<vmem>>, %arg5: memref<8x72xf32, #tpu.memory_space<vmem>>, %arg6: memref<9x8x512xf32, #tpu.memory_space<vmem>>, %arg7: memref<2x8x256xf32, #tpu.memory_space<vmem>>) attributes {dimension_semantics = [#tpu.dimension_semantics<parallel>], iteration_bounds = array<i64: 1>, scalar_prefetch = 0 : i64, scratch_operands = 0 : i64, tpu.core_type = #tpu.core_type<tc>, window_params = [{transform_indices = @transform_0, window_bounds = array<i64: 2, 4, 256>}, {transform_indices = @transform_1, window_bounds = array<i64: 2, 4, 64>}, {pipeline_mode = #tpu.pipeline_mode<synchronous>, transform_indices = @transform_2, window_bounds = array<i64: 64, 256>}, {pipeline_mode = #tpu.pipeline_mode<synchronous>, transform_indices = @transform_3, window_bounds = array<i64: 8, 72>}, {pipeline_mode = #tpu.pipeline_mode<synchronous>, transform_indices = @transform_4, window_bounds = array<i64: 8, 72>}, {pipeline_mode = #tpu.pipeline_mode<synchronous>, transform_indices = @transform_5, window_bounds = array<i64: 9, 8, 512>}, {transform_indices = @transform_6, window_bounds = array<i64: 2, 8, 256>}]} {
    %c0 = arith.constant 0 : index
    %c0_0 = arith.constant 0 : index
    %c0_1 = arith.constant 0 : index
    %0 = vector.load %arg1[%c0, %c0_0, %c0_1] : memref<2x4x256xf32, #tpu.memory_space<vmem>>, vector<1x4x256xf32>
    %1 = vector.shape_cast %0 : vector<1x4x256xf32> to vector<4x256xf32>
    %c1 = arith.constant 1 : index
    %c0_2 = arith.constant 0 : index
    %c0_3 = arith.constant 0 : index
    %2 = vector.load %arg1[%c1, %c0_2, %c0_3] : memref<2x4x256xf32, #tpu.memory_space<vmem>>, vector<1x4x256xf32>
    %3 = vector.shape_cast %2 : vector<1x4x256xf32> to vector<4x256xf32>
    %4 = tpu.concatenate %1, %3 in 1 : vector<4x256xf32>, vector<4x256xf32> -> vector<4x512xf32>
    %c0_4 = arith.constant 0 : index
    %c0_5 = arith.constant 0 : index
    %5 = vector.load %arg3[%c0_4, %c0_5] : memref<64x256xf32, #tpu.memory_space<vmem>>, vector<64x256xf32>
    %c0_6 = arith.constant 0 : index
    %c0_7 = arith.constant 0 : index
    %c0_8 = arith.constant 0 : index
    %6 = vector.load %arg2[%c0_6, %c0_7, %c0_8] : memref<2x4x64xf32, #tpu.memory_space<vmem>>, vector<1x4x64xf32>
    %7 = vector.shape_cast %6 : vector<1x4x64xf32> to vector<4x64xf32>
    %cst = arith.constant dense<0.000000e+00> : vector<4x256xf32>
    %8 = tpu.matmul %7, %5, %cst {dimension_numbers = #tpu.dot_dimension_numbers<[1], [0], [0], [1], [0, 0, 1, 1], [], []>} : vector<4x64xf32>, vector<64x256xf32>, vector<4x256xf32> -> vector<4x256xf32>
    %c1_9 = arith.constant 1 : index
    %c0_10 = arith.constant 0 : index
    %c0_11 = arith.constant 0 : index
    %9 = vector.load %arg2[%c1_9, %c0_10, %c0_11] : memref<2x4x64xf32, #tpu.memory_space<vmem>>, vector<1x4x64xf32>
    %10 = vector.shape_cast %9 : vector<1x4x64xf32> to vector<4x64xf32>
    %cst_12 = arith.constant dense<0.000000e+00> : vector<4x256xf32>
    %11 = tpu.matmul %10, %5, %cst_12 {dimension_numbers = #tpu.dot_dimension_numbers<[1], [0], [0], [1], [0, 0, 1, 1], [], []>} : vector<4x64xf32>, vector<64x256xf32>, vector<4x256xf32> -> vector<4x256xf32>
    %12 = tpu.concatenate %8, %11 in 1 : vector<4x256xf32>, vector<4x256xf32> -> vector<4x512xf32>
    %13 = tpu.concatenate %4, %12 in 0 : vector<4x512xf32>, vector<4x512xf32> -> vector<8x512xf32>
    %c0_13 = arith.constant 0 : index
    %c0_14 = arith.constant 0 : index
    %14 = vector.load %arg4[%c0_13, %c0_14] : memref<8x72xf32, #tpu.memory_space<vmem>>, vector<8x72xf32>
    %c17_i32 = arith.constant 17 : i32
    %15 = tpu.dynamic_rotate %13 by %c17_i32 dim 1 : vector<8x512xf32>, i32 -> vector<8x512xf32>
    %c0_15 = arith.constant 0 : index
    %c0_16 = arith.constant 0 : index
    %c0_17 = arith.constant 0 : index
    %16 = vector.load %arg6[%c0_15, %c0_16, %c0_17] : memref<9x8x512xf32, #tpu.memory_space<vmem>>, vector<1x8x512xf32>
    %17 = vector.shape_cast %16 : vector<1x8x512xf32> to vector<8x512xf32>
    %18 = arith.mulf %15, %17 : vector<8x512xf32>
    %c16_i32 = arith.constant 16 : i32
    %19 = tpu.dynamic_rotate %13 by %c16_i32 dim 1 : vector<8x512xf32>, i32 -> vector<8x512xf32>
    %c1_18 = arith.constant 1 : index
    %c0_19 = arith.constant 0 : index
    %c0_20 = arith.constant 0 : index
    %20 = vector.load %arg6[%c1_18, %c0_19, %c0_20] : memref<9x8x512xf32, #tpu.memory_space<vmem>>, vector<1x8x512xf32>
    %21 = vector.shape_cast %20 : vector<1x8x512xf32> to vector<8x512xf32>
    %22 = arith.mulf %19, %21 : vector<8x512xf32>
    %c15_i32 = arith.constant 15 : i32
    %23 = tpu.dynamic_rotate %13 by %c15_i32 dim 1 : vector<8x512xf32>, i32 -> vector<8x512xf32>
    %c2 = arith.constant 2 : index
    %c0_21 = arith.constant 0 : index
    %c0_22 = arith.constant 0 : index
    %24 = vector.load %arg6[%c2, %c0_21, %c0_22] : memref<9x8x512xf32, #tpu.memory_space<vmem>>, vector<1x8x512xf32>
    %25 = vector.shape_cast %24 : vector<1x8x512xf32> to vector<8x512xf32>
    %26 = arith.mulf %23, %25 : vector<8x512xf32>
    %c1_i32 = arith.constant 1 : i32
    %27 = tpu.dynamic_rotate %13 by %c1_i32 dim 1 : vector<8x512xf32>, i32 -> vector<8x512xf32>
    %c3 = arith.constant 3 : index
    %c0_23 = arith.constant 0 : index
    %c0_24 = arith.constant 0 : index
    %28 = vector.load %arg6[%c3, %c0_23, %c0_24] : memref<9x8x512xf32, #tpu.memory_space<vmem>>, vector<1x8x512xf32>
    %29 = vector.shape_cast %28 : vector<1x8x512xf32> to vector<8x512xf32>
    %30 = arith.mulf %27, %29 : vector<8x512xf32>
    %c511_i32 = arith.constant 511 : i32
    %31 = tpu.dynamic_rotate %13 by %c511_i32 dim 1 : vector<8x512xf32>, i32 -> vector<8x512xf32>
    %c5 = arith.constant 5 : index
    %c0_25 = arith.constant 0 : index
    %c0_26 = arith.constant 0 : index
    %32 = vector.load %arg6[%c5, %c0_25, %c0_26] : memref<9x8x512xf32, #tpu.memory_space<vmem>>, vector<1x8x512xf32>
    %33 = vector.shape_cast %32 : vector<1x8x512xf32> to vector<8x512xf32>
    %34 = arith.mulf %31, %33 : vector<8x512xf32>
    %c497_i32 = arith.constant 497 : i32
    %35 = tpu.dynamic_rotate %13 by %c497_i32 dim 1 : vector<8x512xf32>, i32 -> vector<8x512xf32>
    %c6 = arith.constant 6 : index
    %c0_27 = arith.constant 0 : index
    %c0_28 = arith.constant 0 : index
    %36 = vector.load %arg6[%c6, %c0_27, %c0_28] : memref<9x8x512xf32, #tpu.memory_space<vmem>>, vector<1x8x512xf32>
    %37 = vector.shape_cast %36 : vector<1x8x512xf32> to vector<8x512xf32>
    %38 = arith.mulf %35, %37 : vector<8x512xf32>
    %c496_i32 = arith.constant 496 : i32
    %39 = tpu.dynamic_rotate %13 by %c496_i32 dim 1 : vector<8x512xf32>, i32 -> vector<8x512xf32>
    %c7 = arith.constant 7 : index
    %c0_29 = arith.constant 0 : index
    %c0_30 = arith.constant 0 : index
    %40 = vector.load %arg6[%c7, %c0_29, %c0_30] : memref<9x8x512xf32, #tpu.memory_space<vmem>>, vector<1x8x512xf32>
    %41 = vector.shape_cast %40 : vector<1x8x512xf32> to vector<8x512xf32>
    %42 = arith.mulf %39, %41 : vector<8x512xf32>
    %c495_i32 = arith.constant 495 : i32
    %43 = tpu.dynamic_rotate %13 by %c495_i32 dim 1 : vector<8x512xf32>, i32 -> vector<8x512xf32>
    %c8 = arith.constant 8 : index
    %c0_31 = arith.constant 0 : index
    %c0_32 = arith.constant 0 : index
    %44 = vector.load %arg6[%c8, %c0_31, %c0_32] : memref<9x8x512xf32, #tpu.memory_space<vmem>>, vector<1x8x512xf32>
    %45 = vector.shape_cast %44 : vector<1x8x512xf32> to vector<8x512xf32>
    %46 = arith.mulf %43, %45 : vector<8x512xf32>
    %47 = tpu.concatenate %18, %22, %26, %30, %13, %34, %38, %42, %46 in 0 : vector<8x512xf32>, vector<8x512xf32>, vector<8x512xf32>, vector<8x512xf32>, vector<8x512xf32>, vector<8x512xf32>, vector<8x512xf32>, vector<8x512xf32>, vector<8x512xf32> -> vector<72x512xf32>
    %cst_33 = arith.constant dense<0.000000e+00> : vector<8x512xf32>
    %48 = tpu.matmul %14, %47, %cst_33 {dimension_numbers = #tpu.dot_dimension_numbers<[1], [0], [0], [1], [0, 0, 1, 1], [], []>} : vector<8x72xf32>, vector<72x512xf32>, vector<8x512xf32> -> vector<8x512xf32>
    %49 = vector.extract_strided_slice %48 {offsets = [0, 0], sizes = [8, 256], strides = [1, 1]} : vector<8x512xf32> to vector<8x256xf32>
    %cst_34 = arith.constant dense<0.000000e+00> : vector<8xf32>
    %50 = vector.multi_reduction <add>, %49, %cst_34 [1] : vector<8x256xf32> to vector<8xf32>
    %51 = vector.shape_cast %50 : vector<8xf32> to vector<8x1xf32>
    %52 = arith.mulf %49, %49 : vector<8x256xf32>
    %cst_35 = arith.constant dense<0.000000e+00> : vector<8xf32>
    %53 = vector.multi_reduction <add>, %52, %cst_35 [1] : vector<8x256xf32> to vector<8xf32>
    %54 = vector.shape_cast %53 : vector<8xf32> to vector<8x1xf32>
    %cst_36 = arith.constant 3.906250e-03 : f32
    %55 = vector.broadcast %cst_36 : f32 to vector<8x1xf32>
    %56 = arith.mulf %51, %55 : vector<8x1xf32>
    %cst_37 = arith.constant 3.906250e-03 : f32
    %57 = vector.broadcast %cst_37 : f32 to vector<8x1xf32>
    %58 = arith.mulf %54, %57 : vector<8x1xf32>
    %59 = arith.mulf %56, %56 : vector<8x1xf32>
    %60 = arith.subf %58, %59 : vector<8x1xf32>
    %cst_38 = arith.constant 9.99999974E-6 : f32
    %61 = vector.broadcast %cst_38 : f32 to vector<8x1xf32>
    %62 = arith.addf %60, %61 : vector<8x1xf32>
    %63 = math.rsqrt %62 : vector<8x1xf32>
    %64 = vector.broadcast %56 : vector<8x1xf32> to vector<8x256xf32>
    %65 = arith.subf %49, %64 : vector<8x256xf32>
    %66 = vector.broadcast %63 : vector<8x1xf32> to vector<8x256xf32>
    %67 = arith.mulf %65, %66 : vector<8x256xf32>
    %cst_39 = arith.constant 0.000000e+00 : f32
    %cst_40 = arith.constant 6.000000e+00 : f32
    %68 = vector.broadcast %cst_39 : f32 to vector<8x256xf32>
    %69 = arith.maximumf %68, %67 : vector<8x256xf32>
    %70 = vector.broadcast %cst_40 : f32 to vector<8x256xf32>
    %71 = arith.minimumf %70, %69 : vector<8x256xf32>
    %72 = vector.extract_strided_slice %48 {offsets = [0, 256], sizes = [8, 256], strides = [1, 1]} : vector<8x512xf32> to vector<8x256xf32>
    %cst_41 = arith.constant dense<0.000000e+00> : vector<8xf32>
    %73 = vector.multi_reduction <add>, %72, %cst_41 [1] : vector<8x256xf32> to vector<8xf32>
    %74 = vector.shape_cast %73 : vector<8xf32> to vector<8x1xf32>
    %75 = arith.mulf %72, %72 : vector<8x256xf32>
    %cst_42 = arith.constant dense<0.000000e+00> : vector<8xf32>
    %76 = vector.multi_reduction <add>, %75, %cst_42 [1] : vector<8x256xf32> to vector<8xf32>
    %77 = vector.shape_cast %76 : vector<8xf32> to vector<8x1xf32>
    %cst_43 = arith.constant 3.906250e-03 : f32
    %78 = vector.broadcast %cst_43 : f32 to vector<8x1xf32>
    %79 = arith.mulf %74, %78 : vector<8x1xf32>
    %cst_44 = arith.constant 3.906250e-03 : f32
    %80 = vector.broadcast %cst_44 : f32 to vector<8x1xf32>
    %81 = arith.mulf %77, %80 : vector<8x1xf32>
    %82 = arith.mulf %79, %79 : vector<8x1xf32>
    %83 = arith.subf %81, %82 : vector<8x1xf32>
    %cst_45 = arith.constant 9.99999974E-6 : f32
    %84 = vector.broadcast %cst_45 : f32 to vector<8x1xf32>
    %85 = arith.addf %83, %84 : vector<8x1xf32>
    %86 = math.rsqrt %85 : vector<8x1xf32>
    %87 = vector.broadcast %79 : vector<8x1xf32> to vector<8x256xf32>
    %88 = arith.subf %72, %87 : vector<8x256xf32>
    %89 = vector.broadcast %86 : vector<8x1xf32> to vector<8x256xf32>
    %90 = arith.mulf %88, %89 : vector<8x256xf32>
    %cst_46 = arith.constant 0.000000e+00 : f32
    %cst_47 = arith.constant 6.000000e+00 : f32
    %91 = vector.broadcast %cst_46 : f32 to vector<8x256xf32>
    %92 = arith.maximumf %91, %90 : vector<8x256xf32>
    %93 = vector.broadcast %cst_47 : f32 to vector<8x256xf32>
    %94 = arith.minimumf %93, %92 : vector<8x256xf32>
    %95 = tpu.concatenate %71, %94 in 1 : vector<8x256xf32>, vector<8x256xf32> -> vector<8x512xf32>
    %c0_48 = arith.constant 0 : index
    %c0_49 = arith.constant 0 : index
    %96 = vector.load %arg5[%c0_48, %c0_49] : memref<8x72xf32, #tpu.memory_space<vmem>>, vector<8x72xf32>
    %c17_i32_50 = arith.constant 17 : i32
    %97 = tpu.dynamic_rotate %95 by %c17_i32_50 dim 1 : vector<8x512xf32>, i32 -> vector<8x512xf32>
    %c0_51 = arith.constant 0 : index
    %c0_52 = arith.constant 0 : index
    %c0_53 = arith.constant 0 : index
    %98 = vector.load %arg6[%c0_51, %c0_52, %c0_53] : memref<9x8x512xf32, #tpu.memory_space<vmem>>, vector<1x8x512xf32>
    %99 = vector.shape_cast %98 : vector<1x8x512xf32> to vector<8x512xf32>
    %100 = arith.mulf %97, %99 : vector<8x512xf32>
    %c16_i32_54 = arith.constant 16 : i32
    %101 = tpu.dynamic_rotate %95 by %c16_i32_54 dim 1 : vector<8x512xf32>, i32 -> vector<8x512xf32>
    %c1_55 = arith.constant 1 : index
    %c0_56 = arith.constant 0 : index
    %c0_57 = arith.constant 0 : index
    %102 = vector.load %arg6[%c1_55, %c0_56, %c0_57] : memref<9x8x512xf32, #tpu.memory_space<vmem>>, vector<1x8x512xf32>
    %103 = vector.shape_cast %102 : vector<1x8x512xf32> to vector<8x512xf32>
    %104 = arith.mulf %101, %103 : vector<8x512xf32>
    %c15_i32_58 = arith.constant 15 : i32
    %105 = tpu.dynamic_rotate %95 by %c15_i32_58 dim 1 : vector<8x512xf32>, i32 -> vector<8x512xf32>
    %c2_59 = arith.constant 2 : index
    %c0_60 = arith.constant 0 : index
    %c0_61 = arith.constant 0 : index
    %106 = vector.load %arg6[%c2_59, %c0_60, %c0_61] : memref<9x8x512xf32, #tpu.memory_space<vmem>>, vector<1x8x512xf32>
    %107 = vector.shape_cast %106 : vector<1x8x512xf32> to vector<8x512xf32>
    %108 = arith.mulf %105, %107 : vector<8x512xf32>
    %c1_i32_62 = arith.constant 1 : i32
    %109 = tpu.dynamic_rotate %95 by %c1_i32_62 dim 1 : vector<8x512xf32>, i32 -> vector<8x512xf32>
    %c3_63 = arith.constant 3 : index
    %c0_64 = arith.constant 0 : index
    %c0_65 = arith.constant 0 : index
    %110 = vector.load %arg6[%c3_63, %c0_64, %c0_65] : memref<9x8x512xf32, #tpu.memory_space<vmem>>, vector<1x8x512xf32>
    %111 = vector.shape_cast %110 : vector<1x8x512xf32> to vector<8x512xf32>
    %112 = arith.mulf %109, %111 : vector<8x512xf32>
    %c511_i32_66 = arith.constant 511 : i32
    %113 = tpu.dynamic_rotate %95 by %c511_i32_66 dim 1 : vector<8x512xf32>, i32 -> vector<8x512xf32>
    %c5_67 = arith.constant 5 : index
    %c0_68 = arith.constant 0 : index
    %c0_69 = arith.constant 0 : index
    %114 = vector.load %arg6[%c5_67, %c0_68, %c0_69] : memref<9x8x512xf32, #tpu.memory_space<vmem>>, vector<1x8x512xf32>
    %115 = vector.shape_cast %114 : vector<1x8x512xf32> to vector<8x512xf32>
    %116 = arith.mulf %113, %115 : vector<8x512xf32>
    %c497_i32_70 = arith.constant 497 : i32
    %117 = tpu.dynamic_rotate %95 by %c497_i32_70 dim 1 : vector<8x512xf32>, i32 -> vector<8x512xf32>
    %c6_71 = arith.constant 6 : index
    %c0_72 = arith.constant 0 : index
    %c0_73 = arith.constant 0 : index
    %118 = vector.load %arg6[%c6_71, %c0_72, %c0_73] : memref<9x8x512xf32, #tpu.memory_space<vmem>>, vector<1x8x512xf32>
    %119 = vector.shape_cast %118 : vector<1x8x512xf32> to vector<8x512xf32>
    %120 = arith.mulf %117, %119 : vector<8x512xf32>
    %c496_i32_74 = arith.constant 496 : i32
    %121 = tpu.dynamic_rotate %95 by %c496_i32_74 dim 1 : vector<8x512xf32>, i32 -> vector<8x512xf32>
    %c7_75 = arith.constant 7 : index
    %c0_76 = arith.constant 0 : index
    %c0_77 = arith.constant 0 : index
    %122 = vector.load %arg6[%c7_75, %c0_76, %c0_77] : memref<9x8x512xf32, #tpu.memory_space<vmem>>, vector<1x8x512xf32>
    %123 = vector.shape_cast %122 : vector<1x8x512xf32> to vector<8x512xf32>
    %124 = arith.mulf %121, %123 : vector<8x512xf32>
    %c495_i32_78 = arith.constant 495 : i32
    %125 = tpu.dynamic_rotate %95 by %c495_i32_78 dim 1 : vector<8x512xf32>, i32 -> vector<8x512xf32>
    %c8_79 = arith.constant 8 : index
    %c0_80 = arith.constant 0 : index
    %c0_81 = arith.constant 0 : index
    %126 = vector.load %arg6[%c8_79, %c0_80, %c0_81] : memref<9x8x512xf32, #tpu.memory_space<vmem>>, vector<1x8x512xf32>
    %127 = vector.shape_cast %126 : vector<1x8x512xf32> to vector<8x512xf32>
    %128 = arith.mulf %125, %127 : vector<8x512xf32>
    %129 = tpu.concatenate %100, %104, %108, %112, %95, %116, %120, %124, %128 in 0 : vector<8x512xf32>, vector<8x512xf32>, vector<8x512xf32>, vector<8x512xf32>, vector<8x512xf32>, vector<8x512xf32>, vector<8x512xf32>, vector<8x512xf32>, vector<8x512xf32> -> vector<72x512xf32>
    %cst_82 = arith.constant dense<0.000000e+00> : vector<8x512xf32>
    %130 = tpu.matmul %96, %129, %cst_82 {dimension_numbers = #tpu.dot_dimension_numbers<[1], [0], [0], [1], [0, 0, 1, 1], [], []>} : vector<8x72xf32>, vector<72x512xf32>, vector<8x512xf32> -> vector<8x512xf32>
    %131 = vector.extract_strided_slice %130 {offsets = [0, 0], sizes = [8, 256], strides = [1, 1]} : vector<8x512xf32> to vector<8x256xf32>
    %cst_83 = arith.constant dense<0.000000e+00> : vector<8xf32>
    %132 = vector.multi_reduction <add>, %131, %cst_83 [1] : vector<8x256xf32> to vector<8xf32>
    %133 = vector.shape_cast %132 : vector<8xf32> to vector<8x1xf32>
    %134 = arith.mulf %131, %131 : vector<8x256xf32>
    %cst_84 = arith.constant dense<0.000000e+00> : vector<8xf32>
    %135 = vector.multi_reduction <add>, %134, %cst_84 [1] : vector<8x256xf32> to vector<8xf32>
    %136 = vector.shape_cast %135 : vector<8xf32> to vector<8x1xf32>
    %cst_85 = arith.constant 3.906250e-03 : f32
    %137 = vector.broadcast %cst_85 : f32 to vector<8x1xf32>
    %138 = arith.mulf %133, %137 : vector<8x1xf32>
    %cst_86 = arith.constant 3.906250e-03 : f32
    %139 = vector.broadcast %cst_86 : f32 to vector<8x1xf32>
    %140 = arith.mulf %136, %139 : vector<8x1xf32>
    %141 = arith.mulf %138, %138 : vector<8x1xf32>
    %142 = arith.subf %140, %141 : vector<8x1xf32>
    %cst_87 = arith.constant 9.99999974E-6 : f32
    %143 = vector.broadcast %cst_87 : f32 to vector<8x1xf32>
    %144 = arith.addf %142, %143 : vector<8x1xf32>
    %145 = math.rsqrt %144 : vector<8x1xf32>
    %146 = vector.broadcast %138 : vector<8x1xf32> to vector<8x256xf32>
    %147 = arith.subf %131, %146 : vector<8x256xf32>
    %148 = vector.broadcast %145 : vector<8x1xf32> to vector<8x256xf32>
    %149 = arith.mulf %147, %148 : vector<8x256xf32>
    %cst_88 = arith.constant 0.000000e+00 : f32
    %cst_89 = arith.constant 6.000000e+00 : f32
    %150 = vector.broadcast %cst_88 : f32 to vector<8x256xf32>
    %151 = arith.maximumf %150, %149 : vector<8x256xf32>
    %152 = vector.broadcast %cst_89 : f32 to vector<8x256xf32>
    %153 = arith.minimumf %152, %151 : vector<8x256xf32>
    %154 = vector.extract_strided_slice %130 {offsets = [0, 256], sizes = [8, 256], strides = [1, 1]} : vector<8x512xf32> to vector<8x256xf32>
    %cst_90 = arith.constant dense<0.000000e+00> : vector<8xf32>
    %155 = vector.multi_reduction <add>, %154, %cst_90 [1] : vector<8x256xf32> to vector<8xf32>
    %156 = vector.shape_cast %155 : vector<8xf32> to vector<8x1xf32>
    %157 = arith.mulf %154, %154 : vector<8x256xf32>
    %cst_91 = arith.constant dense<0.000000e+00> : vector<8xf32>
    %158 = vector.multi_reduction <add>, %157, %cst_91 [1] : vector<8x256xf32> to vector<8xf32>
    %159 = vector.shape_cast %158 : vector<8xf32> to vector<8x1xf32>
    %cst_92 = arith.constant 3.906250e-03 : f32
    %160 = vector.broadcast %cst_92 : f32 to vector<8x1xf32>
    %161 = arith.mulf %156, %160 : vector<8x1xf32>
    %cst_93 = arith.constant 3.906250e-03 : f32
    %162 = vector.broadcast %cst_93 : f32 to vector<8x1xf32>
    %163 = arith.mulf %159, %162 : vector<8x1xf32>
    %164 = arith.mulf %161, %161 : vector<8x1xf32>
    %165 = arith.subf %163, %164 : vector<8x1xf32>
    %cst_94 = arith.constant 9.99999974E-6 : f32
    %166 = vector.broadcast %cst_94 : f32 to vector<8x1xf32>
    %167 = arith.addf %165, %166 : vector<8x1xf32>
    %168 = math.rsqrt %167 : vector<8x1xf32>
    %169 = vector.broadcast %161 : vector<8x1xf32> to vector<8x256xf32>
    %170 = arith.subf %154, %169 : vector<8x256xf32>
    %171 = vector.broadcast %168 : vector<8x1xf32> to vector<8x256xf32>
    %172 = arith.mulf %170, %171 : vector<8x256xf32>
    %cst_95 = arith.constant 0.000000e+00 : f32
    %cst_96 = arith.constant 6.000000e+00 : f32
    %173 = vector.broadcast %cst_95 : f32 to vector<8x256xf32>
    %174 = arith.maximumf %173, %172 : vector<8x256xf32>
    %175 = vector.broadcast %cst_96 : f32 to vector<8x256xf32>
    %176 = arith.minimumf %175, %174 : vector<8x256xf32>
    %177 = tpu.concatenate %153, %176 in 1 : vector<8x256xf32>, vector<8x256xf32> -> vector<8x512xf32>
    %178 = vector.extract_strided_slice %177 {offsets = [0, 0], sizes = [8, 256], strides = [1, 1]} : vector<8x512xf32> to vector<8x256xf32>
    %c0_97 = arith.constant 0 : index
    %c0_98 = arith.constant 0 : index
    %c0_99 = arith.constant 0 : index
    %179 = vector.load %arg7[%c0_97, %c0_98, %c0_99] : memref<2x8x256xf32, #tpu.memory_space<vmem>>, vector<1x8x256xf32>
    %180 = vector.shape_cast %179 : vector<1x8x256xf32> to vector<8x256xf32>
    %181 = vector.shape_cast %178 : vector<8x256xf32> to vector<1x8x256xf32>
    tpu.vector_store %arg7[%c0_97, %c0_98, %c0_99], %181 {strides = array<i32>} : memref<2x8x256xf32, #tpu.memory_space<vmem>>, vector<1x8x256xf32>,
    %182 = vector.extract_strided_slice %177 {offsets = [0, 256], sizes = [8, 256], strides = [1, 1]} : vector<8x512xf32> to vector<8x256xf32>
    %c1_100 = arith.constant 1 : index
    %c0_101 = arith.constant 0 : index
    %c0_102 = arith.constant 0 : index
    %183 = vector.load %arg7[%c1_100, %c0_101, %c0_102] : memref<2x8x256xf32, #tpu.memory_space<vmem>>, vector<1x8x256xf32>
    %184 = vector.shape_cast %183 : vector<1x8x256xf32> to vector<8x256xf32>
    %185 = vector.shape_cast %182 : vector<8x256xf32> to vector<1x8x256xf32>
    tpu.vector_store %arg7[%c1_100, %c0_101, %c0_102], %185 {strides = array<i32>} : memref<2x8x256xf32, #tpu.memory_space<vmem>>, vector<1x8x256xf32>,
    return
  }
  func.func @transform_0(%arg0: i32) -> (i32, i32, i32) {
    %c0_i32 = arith.constant 0 : i32
    %c0_i32_0 = arith.constant 0 : i32
    %c0_i32_1 = arith.constant 0 : i32
    return %arg0, %c0_i32, %c0_i32_0 : i32, i32, i32
  }
  func.func @transform_1(%arg0: i32) -> (i32, i32, i32) {
    %c0_i32 = arith.constant 0 : i32
    %c0_i32_0 = arith.constant 0 : i32
    %c0_i32_1 = arith.constant 0 : i32
    return %arg0, %c0_i32, %c0_i32_0 : i32, i32, i32
  }
  func.func @transform_2(%arg0: i32) -> (i32, i32) {
    %c0_i32 = arith.constant 0 : i32
    %c0_i32_0 = arith.constant 0 : i32
    %c0_i32_1 = arith.constant 0 : i32
    return %c0_i32, %c0_i32_0 : i32, i32
  }
  func.func @transform_3(%arg0: i32) -> (i32, i32) {
    %c0_i32 = arith.constant 0 : i32
    %c0_i32_0 = arith.constant 0 : i32
    %c0_i32_1 = arith.constant 0 : i32
    return %c0_i32, %c0_i32_0 : i32, i32
  }
  func.func @transform_4(%arg0: i32) -> (i32, i32) {
    %c0_i32 = arith.constant 0 : i32
    %c0_i32_0 = arith.constant 0 : i32
    %c0_i32_1 = arith.constant 0 : i32
    return %c0_i32, %c0_i32_0 : i32, i32
  }
  func.func @transform_5(%arg0: i32) -> (i32, i32, i32) {
    %c0_i32 = arith.constant 0 : i32
    %c0_i32_0 = arith.constant 0 : i32
    %c0_i32_1 = arith.constant 0 : i32
    %c0_i32_2 = arith.constant 0 : i32
    return %c0_i32, %c0_i32_0, %c0_i32_1 : i32, i32, i32
  }
  func.func @transform_6(%arg0: i32) -> (i32, i32, i32) {
    %c0_i32 = arith.constant 0 : i32
    %c0_i32_0 = arith.constant 0 : i32
    %c0_i32_1 = arith.constant 0 : i32
    return %arg0, %c0_i32, %c0_i32_0 : i32, i32, i32
  }
}

</mosaic_0001>

<bundles_post_ra>
// kernel: unet_skip_up.1
= control target key start
LH: loop header
LB: loop body
LE: loop exit
PB: predicated region body
PF: predicated region fallthrough
CT: control target
= control target key end

     0   :  { %vm55_vm0 = vcmask 523264   ;;  %vm156_vm1 = vcmask 1043456   ;;  %s829_s12 = smov 112   ;;  %s831_s13 = smov 113   ;;  %v170_v45 = vlaneseq  ;;  %vm339_vm10 = vcmask 588800   ;;  %s1551_s2 = inlined_call_operand.vmem [shape: f32[64,256], index: 2, kind: input, shape index: {}]   ;;  %s1552_s0 = inlined_call_operand.vmem [shape: f32[2,4,256], index: 0, kind: input, shape index: {}]   ;;  %s1553_s1 = inlined_call_operand.vmem [shape: f32[2,4,64], index: 1, kind: input, shape index: {}]   ;;  %s1554_s5 = inlined_call_operand.vmem [shape: f32[9,8,512], index: 5, kind: input, shape index: {}]   ;;  %s1555_s3 = inlined_call_operand.vmem [shape: f32[8,72], index: 3, kind: input, shape index: {}]   ;;  %s1556_s4 = inlined_call_operand.vmem [shape: f32[8,72], index: 4, kind: input, shape index: {}]   ;;  %s1557_s6 = inlined_call_operand.vmem [shape: f32[2,8,256], index: 6, kind: output, shape index: {}]  }
   0x1   :  { %v52_v0 = vld [vmem:[%s1551_s2 + $0x70] sm:$0xff]  ;;  %v53_v1 = vld [vmem:[%s1551_s2 + $0x78] sm:$0xff]  ;;  %v50_v2 = vld [vmem:[%s1551_s2 + $0x60] sm:$0xff]  ;;  %s832_s14 = smov 16   ;;  %s833_s15 = smov 127  }
   0x2   :  { %67 = vmatpush.msra.mxu0 %v52_v0  ;;  %87 = vmatpush.msra.mxu1 %v53_v1  ;;  %v51_v3 = vld [vmem:[%s1551_s2 + $0x68] sm:$0xff]  ;;  %v48_v4 = vld [vmem:[%s1551_s2 + $0x50] sm:$0xff]  ;;  %v49_v5 = vld [vmem:[%s1551_s2 + $0x58] sm:$0xff]  ;;  %s834_s16 = smov 17   ;;  %s835_s17 = smov 15   ;;  %v1017_v48 = vand.u32 127, %v170_v45 }
   0x3   :  { %112 = vmatpush.msra.mxu2 %v52_v0  ;;  %132 = vmatpush.msra.mxu3 %v53_v1  ;;  %v46_v6 = vld [vmem:[%s1551_s2 + $0x40] sm:$0xff]  ;;  %v47_v7 = vld [vmem:[%s1551_s2 + $0x48] sm:$0xff]  ;;  %v44_v8 = vld [vmem:[%s1551_s2 + $0x30] sm:$0xff] }
   0x4   :  { %68 = vmatpush.msra.mxu0 %v50_v2  ;;  %88 = vmatpush.msra.mxu1 %v51_v3  ;;  %v45_v9 = vld [vmem:[%s1551_s2 + $0x38] sm:$0xff]  ;;  %v23_v10 = vld [vmem:[%s1552_s0] sm:$0xff]  ;;  %v43_v12 = vld [vmem:[%s1551_s2 + $0x28] sm:$0xff]  ;;  %vm325_vm2 = vcmp.lt.s32.totalorder %v1017_v48, 111  ;;  %vm303_vm3 = vcmp.lt.s32.totalorder %v1017_v48, 112  ;;  %vm281_vm4 = vcmp.lt.s32.totalorder %v1017_v48, 113 }
   0x5   :  { %113 = vmatpush.msra.mxu2 %v50_v2  ;;  %133 = vmatpush.msra.mxu3 %v51_v3  ;;  %27 = vst [vmem:[#allocation1] ss:$2 sm:$0xff] %v23_v10  ;;  %v42_v11 = vld [vmem:[%s1551_s2 + $0x20] sm:$0xff]  ;;  %v40_v13 = vld [vmem:[%s1551_s2 + $0x10] sm:$0xff]  ;;  %v41_v14 = vld [vmem:[%s1551_s2 + $0x18] sm:$0xff]  ;;  %vm259_vm5 = vcmp.lt.s32.totalorder %v1017_v48, 127 }
   0x6   :  { %69 = vmatpush.msra.mxu0 %v48_v4  ;;  %89 = vmatpush.msra.mxu1 %v49_v5  ;;  %v38_v15 = vld [vmem:[%s1551_s2] sm:$0xff]  ;;  %v39_v16 = vld [vmem:[%s1551_s2 + $0x8] sm:$0xff]  ;;  %v1052_v61 = vld [vmem:[%s1554_s5 + $0x118] sm:$0xff]  ;;  %vm237_vm6 = vcmp.lt.s32.totalorder %v1017_v48, 1  ;;  %vm193_vm7 = vcmp.lt.s32.totalorder %v1017_v48, 16  ;;  %vm172_vm8 = vcmp.lt.s32.totalorder %v1017_v48, 17 }
   0x7   :  { %114 = vmatpush.msra.mxu2 %v48_v4  ;;  %134 = vmatpush.msra.mxu3 %v49_v5  ;;  %v54_v17 = vld [vmem:[%s1553_s1] sm:$0xf]  ;;  %v771_v18 = vld [vmem:[%s1553_s1 + $0x4] sm:$0xf]  ;;  %v768_v20 = vld [vmem:[%s1552_s0 + $0x8] sm:$0xff]  ;;  %s828_s1 = smov 1  }
   0x8   :  { %70 = vmatpush.msra.mxu0 %v46_v6  ;;  %90 = vmatpush.msra.mxu1 %v47_v7  ;;  %s830_s0 = smov 111   ;;  %v1025_v50 = vld [vmem:[%s1554_s5 + $0x100] sm:$0xff]  ;;  %v1063_v2 = vld [vmem:[%s1554_s5 + $0xf8] sm:$0xff]  ;;  %vm215_vm9 = vcmp.lt.s32.totalorder %v1017_v48, 15 }
   0x9   :  { %115 = vmatpush.msra.mxu2 %v46_v6  ;;  %135 = vmatpush.msra.mxu3 %v47_v7  ;;  %v1036_v54 = vld [vmem:[%s1554_s5 + $0xe0] sm:$0xff]  ;;  %v1073_v5 = vld [vmem:[%s1554_s5 + $0xd8] sm:$0xff] }
   0xa   :  { %71 = vmatpush.msra.mxu0 %v44_v8  ;;  %91 = vmatpush.msra.mxu1 %v45_v9  ;;  %v1045_v57 = vld [vmem:[%s1554_s5 + $0xc0] sm:$0xff] }
   0xb   :  { %116 = vmatpush.msra.mxu2 %v44_v8  ;;  %136 = vmatpush.msra.mxu3 %v45_v9  ;;  %v1081_v8 = vld [vmem:[%s1554_s5 + $0xb8] sm:$0xff] }
   0xc   :  { %72 = vmatpush.msra.mxu0 %v42_v11  ;;  %92 = vmatpush.msra.mxu1 %v43_v12  ;;  %v28_v19 = vld.sshfl [vmem:[#allocation1] sm:$0xff pattern:$0x75316420]  ;;  %v29_v21 = vld.sshfl [vmem:[#allocation1 + $0x8] sm:$0xff pattern:$0x75316420] }
   0xd   :  { %117 = vmatpush.msra.mxu2 %v42_v11  ;;  %137 = vmatpush.msra.mxu3 %v43_v12  ;;  %33 = vst [vmem:[#allocation1] ss:$2 sm:$0xff] %v768_v20 }
   0xe   :  { %73 = vmatpush.msra.mxu0 %v40_v13  ;;  %93 = vmatpush.msra.mxu1 %v41_v14 }
   0xf   :  { %118 = vmatpush.msra.mxu2 %v40_v13  ;;  %138 = vmatpush.msra.mxu3 %v41_v14  ;;  %v1090_v13 = vld [vmem:[%s1554_s5 + $0xa0] sm:$0xff] }
  0x10   :  { %74 = vmatpush.msra.mxu0 %v38_v15  ;;  %94 = vmatpush.msra.mxu1 %v39_v16 }
  0x11   :  { %769 = vmatmul.msk.f32.vlgmr.msra.gmra.mxu0 %vm55_vm0, %v54_v17  ;;  %770 = vmatmul.msk.f32.vlgmr.msra.gmra.mxu1 %vm55_vm0, %v54_v17 }
  0x12   :  { %119 = vmatpush.msra.mxu2 %v38_v15  ;;  %139 = vmatpush.msra.mxu3 %v39_v16 }
  0x13   :  { %772 = vmatmul.msk.f32.vlgmr.msra.gmra.mxu2 %vm55_vm0, %v771_v18  ;;  %773 = vmatmul.msk.f32.vlgmr.msra.gmra.mxu3 %vm55_vm0, %v771_v18  ;;  %v1100_v18 = vld [vmem:[%s1554_s5 + $0x108] sm:$0xff] }
  0x14   :  { %v34_v30 = vld.sshfl [vmem:[#allocation1] sm:$0xff pattern:$0x75316420]  ;;  %v35_v34 = vld.sshfl [vmem:[#allocation1 + $0x8] sm:$0xff pattern:$0x75316420] }
  0x8e   :  { %v76_v22 = vpop.f32.mrf.mxu0  ;;  %v96_v23 = vpop.f32.mrf.mxu1 }
  0x8f   :  { %v148_v24 = vrot.slane %v76_v22, 4  ;;  %v149_v25 = vrot.slane %v96_v23, 4 }
  0x91   :  { %v932_v26 = vsel %vm156_vm1, %v28_v19, %v148_v24  ;;  %v935_v27 = vsel %vm156_vm1, %v29_v21, %v149_v25  ;;  %v1105_v19 = vld [vmem:[%s1554_s5 + $0x110] sm:$0xff] }
  0x92   :  { %231 = vrot.lane.b32.xlu2 %v935_v27, %s828_s1  ;;  %295 = vrot.lane.b32.xlu1 %v932_v26, %s829_s12 }
  0x93   :  { %317 = vrot.lane.b32.xlu0 %v932_v26, %s830_s0 }
  0x96   :  { %v121_v28 = vpop.f32.mrf.mxu2  ;;  %v141_v32 = vpop.f32.mrf.mxu3 }
  0x97   :  { %v150_v29 = vrot.slane %v121_v28, 4  ;;  %v151_v33 = vrot.slane %v141_v32, 4  ;;  %v1125_v28 = vld [vmem:[%s1554_s5 + $0xf0] sm:$0xff] }
  0x99   :  { %v950_v31 = vsel %vm156_vm1, %v34_v30, %v150_v29  ;;  %v959_v35 = vsel %vm156_vm1, %v35_v34, %v151_v33  ;;  %v1138_v34 = vld [vmem:[%s1554_s5 + $0xc8] sm:$0xff] }
  0x9a   :  { %275 = vrot.lane.b32.xlu2 %v935_v27, %s831_s13  ;;  %297 = vrot.lane.b32.xlu1 %v935_v27, %s829_s12 }
  0x9b   :  { %273 = vrot.lane.b32.xlu0 %v932_v26, %s831_s13 }
  0xa2   :  { %187 = vrot.lane.b32.xlu1 %v935_v27, %s832_s14  ;;  %299 = vrot.lane.b32.xlu2 %v950_v31, %s829_s12 }
  0xa3   :  { %251 = vrot.lane.b32.xlu0 %v932_v26, %s833_s15 }
  0xaa   :  { %164 = vrot.lane.b32.xlu1 %v935_v27, %s834_s16  ;;  %301 = vrot.lane.b32.xlu2 %v959_v35, %s829_s12 }
  0xab   :  { %319 = vrot.lane.b32.xlu0 %v935_v27, %s830_s0 }
  0xb2   :  { %323 = vrot.lane.b32.xlu1 %v959_v35, %s830_s0  ;;  %279 = vrot.lane.b32.xlu2 %v959_v35, %s831_s13 }
  0xb3   :  { %209 = vrot.lane.b32.xlu0 %v935_v27, %s835_s17 }
  0xba   :  { %277 = vrot.lane.b32.xlu1 %v950_v31, %s831_s13  ;;  %257 = vrot.lane.b32.xlu2 %v959_v35, %s833_s15 }
  0xbb   :  { %253 = vrot.lane.b32.xlu0 %v935_v27, %s833_s15 }
  0xc2   :  { %255 = vrot.lane.b32.xlu1 %v950_v31, %s833_s15  ;;  %213 = vrot.lane.b32.xlu2 %v959_v35, %s835_s17 }
  0xc3   :  { %321 = vrot.lane.b32.xlu0 %v950_v31, %s830_s0 }
  0xca   :  { %235 = vrot.lane.b32.xlu1 %v959_v35, %s828_s1  ;;  %189 = vrot.lane.b32.xlu2 %v950_v31, %s832_s14 }
  0xcb   :  { %233 = vrot.lane.b32.xlu0 %v950_v31, %s828_s1 }
  0xd2   :  { %211 = vrot.lane.b32.xlu1 %v950_v31, %s835_s17  ;;  %166 = vrot.lane.b32.xlu2 %v950_v31, %s834_s16 }
  0xd3   :  { %191 = vrot.lane.b32.xlu0 %v959_v35, %s832_s14 }
  0xda   :  { %229 = vrot.lane.b32.xlu1 %v932_v26, %s828_s1  ;;  %207 = vrot.lane.b32.xlu2 %v932_v26, %s835_s17 }
  0xdb   :  { %168 = vrot.lane.b32.xlu0 %v959_v35, %s834_s16 }
  0xe2   :  { %162 = vrot.lane.b32.xlu1 %v932_v26, %s834_s16 }
  0xe3   :  { %185 = vrot.lane.b32.xlu0 %v932_v26, %s832_s14 }
  0xec   :  { %v1007_v36 = vpop.permute.xlu2 %231 }
  0xf4   :  { %v1009_v37 = vpop.permute.xlu2 %275 }
  0xfc   :  { %v1011_v38 = vpop.permute.xlu2 %299 }
 0x104   :  { %v296_v39 = vpop.permute.xlu1 %295  ;;  %v302_v43 = vpop.permute.xlu2 %301 }
 0x105   :  { %v318_v40 = vpop.permute.xlu0 %317  ;;  %v307_v63 = vsel %vm303_vm3, %v302_v43, %v296_v39  ;;  %v304_v21 = vsel %vm303_vm3, %v1011_v38, %v302_v43 }
 0x106   :  { %v316_v6 = vmul.f32 %v1063_v2, %v307_v63  ;;  %v1189_v63 = vld [vmem:[%s1554_s5 + $0x50] sm:$0xff] }
 0x10c   :  { %v298_v41 = vpop.permute.xlu1 %297  ;;  %v1015_v47 = vpop.permute.xlu2 %279 }
 0x10d   :  { %v274_v42 = vpop.permute.xlu0 %273  ;;  %v306_v52 = vsel %vm303_vm3, %v296_v39, %v298_v41  ;;  %v305_v22 = vsel %vm303_vm3, %v298_v41, %v1011_v38  ;;  %v315_v39 = vmul.f32 %v1125_v28, %v304_v21  ;;  %v1154_v41 = vld [vmem:[%s1554_s5 + $0xa8] sm:$0xff] }
 0x10e   :  { %v284_v56 = vsel %vm281_vm4, %v274_v42, %v1009_v37  ;;  %v313_v58 = vmul.f32 %v1036_v54, %v306_v52  ;;  %v285_v4 = vsel %vm281_vm4, %v1015_v47, %v274_v42  ;;  %v1159_v42 = vld [vmem:[%s1554_s5 + $0xb0] sm:$0xff] }
 0x10f   :  { %v291_v60 = vmul.f32 %v1045_v57, %v284_v56  ;;  %v294_v9 = vmul.f32 %v1073_v5, %v285_v4 }
 0x114   :  { %v1013_v44 = vpop.permute.xlu1 %187  ;;  %v258_v59 = vpop.permute.xlu2 %257 }
 0x115   :  { %v252_v46 = vpop.permute.xlu0 %251 }
 0x116   :  { %v263_v7 = vsel %vm259_vm5, %v258_v59, %v252_v46 }
 0x117   :  { %v272_v12 = vmul.f32 %v1081_v8, %v263_v7  ;;  %v1210_v7 = vld [vmem:[%s1554_s5 + $0x30] sm:$0xff] }
 0x11c   :  { %v1020_v49 = vpop.permute.xlu1 %164  ;;  %v1084_v10 = vpop.permute.xlu2 %213 }
 0x11d   :  { %v320_v51 = vpop.permute.xlu0 %319 }
 0x11e   :  { %v328_v53 = vsel %vm325_vm2, %v318_v40, %v320_v51 }
 0x11f   :  { %v335_v55 = vmul.f32 %v1025_v50, %v328_v53 }
 0x121   :  { %350 = vmatpush.msrb.mxu0 %v335_v55 }
 0x123   :  { %351 = vmatpush.msrb.mxu0 %v313_v58  ;;  %v1179_v58 = vld [vmem:[%s1554_s5 + $0x70] sm:$0xff] }
 0x124   :  { %v324_v62 = vpop.permute.xlu1 %323  ;;  %v190_v23 = vpop.permute.xlu2 %189 }
 0x125   :  { %352 = vmatpush.msrb.mxu0 %v291_v60  ;;  %v1056_v0 = vpop.permute.xlu0 %209  ;;  %v329_v1 = vsel %vm325_vm2, %v324_v62, %v318_v40 }
 0x126   :  { %v338_v3 = vmul.f32 %v1052_v61, %v329_v1  ;;  %v1194_v1 = vld [vmem:[%s1554_s5 + $0x58] sm:$0xff] }
 0x128   :  { %410 = vmatpush.msrb.mxu3 %v338_v3 }
 0x12a   :  { %411 = vmatpush.msrb.mxu3 %v316_v6 }
 0x12c   :  { %v278_v11 = vpop.permute.xlu1 %277  ;;  %412 = vmatpush.msrb.mxu3 %v294_v9  ;;  %v167_v60 = vpop.permute.xlu2 %166  ;;  %v1215_v9 = vld [vmem:[%s1554_s5 + $0x38] sm:$0xff] }
 0x12d   :  { %v254_v14 = vpop.permute.xlu0 %253  ;;  %v282_v32 = vsel %vm281_vm4, %v278_v11, %v1015_v47  ;;  %v283_v33 = vsel %vm281_vm4, %v1009_v37, %v278_v11  ;;  %v1167_v47 = vld [vmem:[%s1554_s5 + $0x78] sm:$0xff] }
 0x12e   :  { %v262_v15 = vsel %vm259_vm5, %v252_v46, %v254_v14  ;;  %413 = vmatpush.msrb.mxu3 %v272_v12  ;;  %v292_v43 = vmul.f32 %v1138_v34, %v283_v33 }
 0x12f   :  { %v269_v16 = vmul.f32 %v1090_v13, %v262_v15  ;;  %v174_v15 = vsel %vm172_vm8, %v1020_v49, %v167_v60 }
 0x130   :  { %414 = vmatpush.msrb.mxu3 %v959_v35  ;;  %v1143_v35 = vld [vmem:[%s1554_s5 + $0xd0] sm:$0xff] }
 0x131   :  { %353 = vmatpush.msrb.mxu0 %v269_v16  ;;  %v293_v45 = vmul.f32 %v1143_v35, %v282_v32  ;;  %v1227_v16 = vld [vmem:[%s1554_s5 + $0x10] sm:$0xff] }
 0x133   :  { %354 = vmatpush.msrb.mxu0 %v932_v26  ;;  %v1120_v26 = vld [vmem:[%s1554_s5 + $0xe8] sm:$0xff] }
 0x134   :  { %v256_v17 = vpop.permute.xlu1 %255  ;;  %v314_v38 = vmul.f32 %v1120_v26, %v305_v22  ;;  %v208_v21 = vpop.permute.xlu2 %207  ;;  %v183_v22 = vmul.f32 %v1227_v16, %v174_v15 }
 0x135   :  { %v322_v20 = vpop.permute.xlu0 %321  ;;  %v260_v40 = vsel %vm259_vm5, %v256_v17, %v258_v59  ;;  %v261_v37 = vsel %vm259_vm5, %v254_v14, %v256_v17  ;;  %v219_v32 = vsel %vm215_vm9, %v1084_v10, %v208_v21 }
 0x136   :  { %v326_v24 = vsel %vm325_vm2, %v322_v20, %v324_v62  ;;  %v327_v25 = vsel %vm325_vm2, %v320_v51, %v322_v20  ;;  %v270_v52 = vmul.f32 %v1154_v41, %v261_v37  ;;  %v271_v53 = vmul.f32 %v1159_v42, %v260_v40  ;;  %v1262_v40 = vld [vmem:[%s1554_s5 + $0x40] sm:$0xff] }
 0x137   :  { %v336_v29 = vmul.f32 %v1100_v18, %v327_v25  ;;  %v337_v30 = vmul.f32 %v1105_v19, %v326_v24  ;;  %v1238_v24 = vld [vmem:[%s1554_s5 + $0x60] sm:$0xff]  ;;  %v1243_v25 = vld [vmem:[%s1554_s5 + $0x68] sm:$0xff]  ;;  %v218_v37 = vsel %vm215_vm9, %v208_v21, %v1056_v0 }
 0x139   :  { %370 = vmatpush.msrb.mxu1 %v336_v29  ;;  %390 = vmatpush.msrb.mxu2 %v337_v30  ;;  %v1248_v30 = vld [vmem:[%s1554_s5 + $0x18] sm:$0xff] }
 0x13b   :  { %371 = vmatpush.msrb.mxu1 %v314_v38  ;;  %391 = vmatpush.msrb.mxu2 %v315_v39 }
 0x13c   :  { %v236_v46 = vpop.permute.xlu1 %235 }
 0x13d   :  { %372 = vmatpush.msrb.mxu1 %v292_v43  ;;  %392 = vmatpush.msrb.mxu2 %v293_v45  ;;  %v234_v51 = vpop.permute.xlu0 %233  ;;  %v1274_v45 = vld [vmem:[%s1554_s5 + $0x48] sm:$0xff] }
 0x13e   :  { %v238_v55 = vsel %vm237_vm6, %v234_v51, %v236_v46  ;;  %v239_v56 = vsel %vm237_vm6, %v1007_v36, %v234_v51  ;;  %v225_v51 = vmul.f32 %v1262_v40, %v219_v32 }
 0x13f   :  { %373 = vmatpush.msrb.mxu1 %v270_v52  ;;  %393 = vmatpush.msrb.mxu2 %v271_v53  ;;  %v250_v59 = vmul.f32 %v1167_v47, %v238_v55  ;;  %v249_v62 = vmul.f32 %v1179_v58, %v239_v56  ;;  %v1283_v53 = vld [vmem:[%s1554_s5 + $0x20] sm:$0xff]  ;;  %v1288_v55 = vld [vmem:[%s1554_s5 + $0x28] sm:$0xff] }
 0x141   :  { %374 = vmatpush.msrb.mxu1 %v935_v27  ;;  %394 = vmatpush.msrb.mxu2 %v950_v31  ;;  %v195_v31 = vsel %vm193_vm7, %v1013_v44, %v190_v23 }
 0x142   :  { %415 = vmatpush.msrb.mxu3 %v250_v59  ;;  %v205_v17 = vmul.f32 %v1210_v7, %v195_v31  ;;  %v1303_v31 = vld [vmem:[%s1554_s5] sm:$0xff] }
 0x143   :  { %395 = vmatpush.msrb.mxu2 %v249_v62 }
 0x144   :  { %v212_v27 = vpop.permute.xlu1 %211 }
 0x145   :  { %v216_v3 = vsel %vm215_vm9, %v212_v27, %v1084_v10  ;;  %v217_v4 = vsel %vm215_vm9, %v1056_v0, %v212_v27  ;;  %v192_v6 = vpop.permute.xlu0 %191  ;;  %v226_v0 = vmul.f32 %v1274_v45, %v218_v37 }
 0x146   :  { %v194_v11 = vsel %vm193_vm7, %v190_v23, %v192_v6  ;;  %v227_v12 = vmul.f32 %v1189_v63, %v217_v4  ;;  %v228_v14 = vmul.f32 %v1194_v1, %v216_v3  ;;  %v161_v23 = vld [vmem:[%s1555_s3] sm:$0xff]  ;;  %v1308_v3 = vld [vmem:[%s1554_s5 + $0x8] sm:$0xff] }
 0x147   :  { %v206_v20 = vmul.f32 %v1215_v9, %v194_v11 }
 0x148   :  { %396 = vmatpush.msrb.mxu2 %v227_v12  ;;  %416 = vmatpush.msrb.mxu3 %v228_v14 }
 0x14a   :  { %397 = vmatpush.msrb.mxu2 %v205_v17  ;;  %417 = vmatpush.msrb.mxu3 %v206_v20 }
 0x14c   :  { %v230_v29 = vpop.permute.xlu1 %229  ;;  %398 = vmatpush.msrb.mxu2 %v183_v22 }
 0x14d   :  { %v240_v33 = vsel %vm237_vm6, %v230_v29, %v1007_v36  ;;  %v241_v38 = vsel %vm237_vm6, %v236_v46, %v230_v29  ;;  %v169_v39 = vpop.permute.xlu0 %168  ;;  %804 = vmatmul.msk.f32.vlgmr.msrb.gmra.mxu2 %vm339_vm10, %v161_v23 }
 0x14e   :  { %v173_v10 = vsel %vm172_vm8, %v167_v60, %v169_v39  ;;  %v247_v36 = vmul.f32 %v1238_v24, %v241_v38  ;;  %v248_v43 = vmul.f32 %v1243_v25, %v240_v33 }
 0x14f   :  { %v184_v46 = vmul.f32 %v1248_v30, %v173_v10 }
 0x150   :  { %355 = vmatpush.msrb.mxu0 %v247_v36  ;;  %375 = vmatpush.msrb.mxu1 %v248_v43 }
 0x151   :  { %418 = vmatpush.msrb.mxu3 %v184_v46 }
 0x152   :  { %805 = vmatmul.msk.f32.vlgmr.msrb.gmra.mxu3 %vm339_vm10, %v161_v23  ;;  %356 = vmatpush.msrb.mxu0 %v225_v51 }
 0x153   :  { %376 = vmatpush.msrb.mxu1 %v226_v0 }
 0x154   :  { %v163_v52 = vpop.permute.xlu1 %162 }
 0x155   :  { %v186_v56 = vpop.permute.xlu0 %185  ;;  %v175_v59 = vsel %vm172_vm8, %v163_v52, %v1020_v49  ;;  %v176_v60 = vsel %vm172_vm8, %v169_v39, %v163_v52 }
 0x156   :  { %v196_v62 = vsel %vm193_vm7, %v186_v56, %v1013_v44  ;;  %v197_v27 = vsel %vm193_vm7, %v192_v6, %v186_v56  ;;  %v181_v44 = vmul.f32 %v1303_v31, %v176_v60  ;;  %v182_v6 = vmul.f32 %v1308_v3, %v175_v59 }
 0x157   :  { %v203_v49 = vmul.f32 %v1283_v53, %v197_v27  ;;  %v204_v4 = vmul.f32 %v1288_v55, %v196_v62 }
 0x159   :  { %357 = vmatpush.msrb.mxu0 %v203_v49  ;;  %377 = vmatpush.msrb.mxu1 %v204_v4 }
 0x15b   :  { %358 = vmatpush.msrb.mxu0 %v181_v44  ;;  %378 = vmatpush.msrb.mxu1 %v182_v6 }
 0x15c   :  { %802 = vmatmul.msk.f32.vlgmr.msrb.gmra.mxu0 %vm339_vm10, %v161_v23  ;;  %803 = vmatmul.msk.f32.vlgmr.msrb.gmra.mxu1 %vm339_vm10, %v161_v23 }
 0x1d0   :  { %v1316_v11 = vpop.f32.mrf.mxu2 }
 0x1d1   :  { %v457_v32 = vmul.f32 %v1316_v11, %v1316_v11 }
 0x1d5   :  { %v1318_v12 = vpop.f32.mrf.mxu3 }
 0x1d6   :  { %v454_v14 = vadd.f32 %v1318_v12, %v1316_v11  ;;  %v458_v23 = vmul.f32 %v1318_v12, %v1318_v12 }
 0x1d8   :  { %455 = vadd.xlane.f32.xlu0 %v454_v14  ;;  %v459_v33 = vadd.f32 %v458_v23, %v457_v32 }
 0x1d9   :  { %v360_v15 = vpop.f32.mrf.mxu0  ;;  %v380_v17 = vpop.f32.mrf.mxu1 }
 0x1da   :  { %v423_v20 = vadd.f32 %v380_v17, %v360_v15  ;;  %v426_v21 = vmul.f32 %v360_v15, %v360_v15  ;;  %v427_v22 = vmul.f32 %v380_v17, %v380_v17 }
 0x1dc   :  { %424 = vadd.xlane.f32.xlu2 %v423_v20  ;;  %v428_v29 = vadd.f32 %v427_v22, %v426_v21 }
 0x1de   :  { %429 = vadd.xlane.f32.xlu1 %v428_v29 }
 0x1e4   :  { %460 = vadd.xlane.f32.xlu2 %v459_v33 }
 0x24b   :  { %v456_v37 = vpop.xlane.xlu0 %455 }
 0x24c   :  { %v462_v46 = vmul.f32 0.00390625, %v456_v37 }
 0x24e   :  { %v464_v52 = vmul.f32 %v462_v46, %v462_v46 }
 0x24f   :  { %v425_v38 = vpop.xlane.xlu2 %424 }
 0x250   :  { %v431_v39 = vmul.f32 0.00390625, %v425_v38 }
 0x251   :  { %v430_v10 = vpop.xlane.xlu1 %429 }
 0x252   :  { %v432_v36 = vmul.f32 0.00390625, %v430_v10  ;;  %v433_v43 = vmul.f32 %v431_v39, %v431_v39  ;;  %v446_v29 = vsub.f32 %v360_v15, %v431_v39  ;;  %v447_v32 = vsub.f32 %v380_v17, %v431_v39 }
 0x253   :  { %v478_v17 = vsub.f32 %v1318_v12, %v462_v46  ;;  %v477_v12 = vsub.f32 %v1316_v11, %v462_v46 }
 0x254   :  { %v434_v51 = vsub.f32 %v432_v36, %v433_v43 }
 0x256   :  { %v435_v0 = vadd.f32 1e-05, %v434_v51 }
 0x257   :  { %v461_v56 = vpop.xlane.xlu2 %460 }
 0x258   :  { %820 = vrsqrt.f32 %v435_v0  ;;  %v463_v59 = vmul.f32 0.00390625, %v461_v56  ;;  %vm442_vm12 = vweird.f32 %v435_v0 }
 0x25a   :  { %v465_v60 = vsub.f32 %v463_v59, %v464_v52 }
 0x25c   :  { %v466_v62 = vadd.f32 1e-05, %v465_v60 }
 0x25e   :  { %v821_v27 = vpop.eup %820  ;;  %822 = vrsqrt.f32 %v466_v62  ;;  %vm473_vm14 = vweird.f32 %v466_v62 }
 0x25f   :  { %v437_v49 = vmul.f32 %v821_v27, %v435_v0  ;;  %vm443_vm11 = vweird.f32 %v821_v27 }
 0x260   :  { %vm444_vm13 = vmor %vm442_vm12, %vm443_vm11 }
 0x261   :  { %v438_v4 = vmul.f32 %v821_v27, %v437_v49 }
 0x263   :  { %v439_v44 = vmul.f32 0.5, %v438_v4 }
 0x264   :  { %v823_v6 = vpop.eup %822 }
 0x265   :  { %v440_v14 = vsub.f32 1.5, %v439_v44  ;;  %v468_v20 = vmul.f32 %v823_v6, %v466_v62  ;;  %vm474_vm15 = vweird.f32 %v823_v6 }
 0x266   :  { %vm475_vm0 = vmor %vm473_vm14, %vm474_vm15 }
 0x267   :  { %v441_v21 = vmul.f32 %v821_v27, %v440_v14  ;;  %v469_v22 = vmul.f32 %v823_v6, %v468_v20 }
 0x269   :  { %v445_v23 = vsel %vm444_vm13, %v821_v27, %v441_v21  ;;  %v470_v33 = vmul.f32 0.5, %v469_v22 }
 0x26a   :  { %v448_v38 = vmul.f32 %v446_v29, %v445_v23  ;;  %v449_v37 = vmul.f32 %v447_v32, %v445_v23 }
 0x26b   :  { %v471_v10 = vsub.f32 1.5, %v470_v33 }
 0x26c   :  { %v450_v36 = vmax.f32 %v448_v38, 0.0  ;;  %v451_v43 = vmax.f32 %v449_v37, 0.0 }
 0x26d   :  { %v472_v56 = vmul.f32 %v823_v6, %v471_v10 }
 0x26e   :  { %v1326_v51 = vmin.f32 %v450_v36, 6.0  ;;  %v1328_v52 = vmin.f32 %v451_v43, 6.0 }
 0x26f   :  { %v476_v15 = vsel %vm475_vm0, %v823_v6, %v472_v56 }
 0x270   :  { %536 = vrot.lane.b32.xlu1 %v1328_v52, %s828_s1  ;;  %582 = vrot.lane.b32.xlu0 %v1326_v51, %s829_s12  ;;  %v480_v39 = vmul.f32 %v478_v17, %v476_v15  ;;  %v479_v60 = vmul.f32 %v477_v12, %v476_v15 }
 0x271   :  { %598 = vrot.lane.b32.xlu2 %v1326_v51, %s830_s0 }
 0x272   :  { %v482_v0 = vmax.f32 %v480_v39, 0.0  ;;  %v481_v62 = vmax.f32 %v479_v60, 0.0 }
 0x274   :  { %v1343_v59 = vmin.f32 %v482_v0, 6.0  ;;  %v1358_v27 = vmin.f32 %v481_v62, 6.0 }
 0x278   :  { %568 = vrot.lane.b32.xlu1 %v1328_v52, %s831_s13  ;;  %566 = vrot.lane.b32.xlu0 %v1326_v51, %s831_s13 }
 0x279   :  { %584 = vrot.lane.b32.xlu2 %v1328_v52, %s829_s12 }
 0x280   :  { %550 = vrot.lane.b32.xlu0 %v1326_v51, %s833_s15  ;;  %604 = vrot.lane.b32.xlu1 %v1343_v59, %s830_s0 }
 0x281   :  { %504 = vrot.lane.b32.xlu2 %v1328_v52, %s832_s14 }
 0x288   :  { %600 = vrot.lane.b32.xlu0 %v1328_v52, %s830_s0  ;;  %588 = vrot.lane.b32.xlu1 %v1343_v59, %s829_s12 }
 0x289   :  { %488 = vrot.lane.b32.xlu2 %v1328_v52, %s834_s16 }
 0x290   :  { %520 = vrot.lane.b32.xlu0 %v1328_v52, %s835_s17  ;;  %572 = vrot.lane.b32.xlu1 %v1343_v59, %s831_s13 }
 0x291   :  { %586 = vrot.lane.b32.xlu2 %v1358_v27, %s829_s12 }
 0x298   :  { %552 = vrot.lane.b32.xlu0 %v1328_v52, %s833_s15  ;;  %556 = vrot.lane.b32.xlu1 %v1343_v59, %s833_s15 }
 0x299   :  { %570 = vrot.lane.b32.xlu2 %v1358_v27, %s831_s13 }
 0x2a0   :  { %524 = vrot.lane.b32.xlu1 %v1343_v59, %s835_s17  ;;  %602 = vrot.lane.b32.xlu0 %v1358_v27, %s830_s0 }
 0x2a1   :  { %554 = vrot.lane.b32.xlu2 %v1358_v27, %s833_s15 }
 0x2a8   :  { %506 = vrot.lane.b32.xlu1 %v1358_v27, %s832_s14  ;;  %538 = vrot.lane.b32.xlu0 %v1358_v27, %s828_s1 }
 0x2a9   :  { %540 = vrot.lane.b32.xlu2 %v1343_v59, %s828_s1 }
 0x2b0   :  { %490 = vrot.lane.b32.xlu1 %v1358_v27, %s834_s16  ;;  %508 = vrot.lane.b32.xlu0 %v1343_v59, %s832_s14 }
 0x2b1   :  { %522 = vrot.lane.b32.xlu2 %v1358_v27, %s835_s17 }
 0x2b8   :  { %518 = vrot.lane.b32.xlu1 %v1326_v51, %s835_s17  ;;  %492 = vrot.lane.b32.xlu0 %v1343_v59, %s834_s16 }
 0x2b9   :  { %534 = vrot.lane.b32.xlu2 %v1326_v51, %s828_s1 }
 0x2c0   :  { %502 = vrot.lane.b32.xlu0 %v1326_v51, %s832_s14 }
 0x2c1   :  { %486 = vrot.lane.b32.xlu2 %v1326_v51, %s834_s16 }
 0x2cb   :  { %v599_v11 = vpop.permute.xlu2 %598 }
 0x2d3   :  { %v585_v46 = vpop.permute.xlu2 %584 }
 0x2db   :  { %v1400_v49 = vpop.permute.xlu2 %504 }
 0x2e2   :  { %v1402_v4 = vpop.permute.xlu1 %536  ;;  %v583_v44 = vpop.permute.xlu0 %582 }
 0x2e3   :  { %v1404_v6 = vpop.permute.xlu2 %488  ;;  %v592_v10 = vsel %vm303_vm3, %v583_v44, %v585_v46 }
 0x2e4   :  { %v594_v39 = vmul.f32 %v1036_v54, %v592_v10 }
 0x2ea   :  { %v569_v14 = vpop.permute.xlu1 %568  ;;  %v567_v20 = vpop.permute.xlu0 %566 }
 0x2eb   :  { %v587_v21 = vpop.permute.xlu2 %586 }
 0x2f2   :  { %v605_v22 = vpop.permute.xlu1 %604  ;;  %v551_v29 = vpop.permute.xlu0 %550 }
 0x2f3   :  { %v609_v32 = vsel %vm325_vm2, %v605_v22, %v599_v11  ;;  %v571_v23 = vpop.permute.xlu2 %570 }
 0x2f4   :  { %v613_v33 = vmul.f32 %v1052_v61, %v609_v32  ;;  %v576_v61 = vsel %vm281_vm4, %v567_v20, %v569_v14 }
 0x2f5   :  { %v578_v0 = vmul.f32 %v1045_v57, %v576_v61 }
 0x2f6   :  { %684 = vmatpush.msra.mxu3 %v613_v33 }
 0x2fa   :  { %v589_v38 = vpop.permute.xlu1 %588  ;;  %v601_v37 = vpop.permute.xlu0 %600 }
 0x2fb   :  { %v593_v36 = vsel %vm303_vm3, %v589_v38, %v583_v44  ;;  %v555_v43 = vpop.permute.xlu2 %554  ;;  %v608_v56 = vsel %vm325_vm2, %v599_v11, %v601_v37 }
 0x2fc   :  { %v597_v15 = vmul.f32 %v1063_v2, %v593_v36  ;;  %v610_v17 = vmul.f32 %v1025_v50, %v608_v56  ;;  %v591_v36 = vsel %vm303_vm3, %v585_v46, %v587_v21 }
 0x2fe   :  { %624 = vmatpush.msra.mxu0 %v610_v17  ;;  %685 = vmatpush.msra.mxu3 %v597_v15  ;;  %v575_v15 = vsel %vm281_vm4, %v569_v14, %v571_v23 }
 0x300   :  { %625 = vmatpush.msra.mxu0 %v594_v39 }
 0x302   :  { %v573_v12 = vpop.permute.xlu1 %572  ;;  %626 = vmatpush.msra.mxu0 %v578_v0  ;;  %v1421_v60 = vpop.permute.xlu0 %520 }
 0x303   :  { %v577_v62 = vsel %vm281_vm4, %v573_v12, %v567_v20  ;;  %v541_v2 = vpop.permute.xlu2 %540 }
 0x304   :  { %v581_v50 = vmul.f32 %v1073_v5, %v577_v62 }
 0x306   :  { %686 = vmatpush.msra.mxu3 %v581_v50 }
 0x30a   :  { %v557_v11 = vpop.permute.xlu1 %556  ;;  %v553_v44 = vpop.permute.xlu0 %552 }
 0x30b   :  { %v561_v54 = vsel %vm259_vm5, %v557_v11, %v551_v29  ;;  %v523_v32 = vpop.permute.xlu2 %522  ;;  %v560_v57 = vsel %vm259_vm5, %v551_v29, %v553_v44 }
 0x30c   :  { %v565_v33 = vmul.f32 %v1081_v8, %v561_v54  ;;  %v562_v10 = vmul.f32 %v1090_v13, %v560_v57  ;;  %v590_v13 = vsel %vm303_vm3, %v587_v21, %v589_v38  ;;  %v559_v38 = vsel %vm259_vm5, %v553_v44, %v555_v43 }
 0x30d   :  { %v596_v21 = vmul.f32 %v1125_v28, %v590_v13 }
 0x30e   :  { %627 = vmatpush.msra.mxu0 %v562_v10  ;;  %687 = vmatpush.msra.mxu3 %v565_v33 }
 0x310   :  { %628 = vmatpush.msra.mxu0 %v1326_v51  ;;  %688 = vmatpush.msra.mxu3 %v1343_v59 }
 0x312   :  { %v1434_v5 = vpop.permute.xlu1 %524  ;;  %v603_v20 = vpop.permute.xlu0 %602 }
 0x313   :  { %v535_v56 = vpop.permute.xlu2 %534  ;;  %v606_v29 = vsel %vm325_vm2, %v603_v20, %v605_v22  ;;  %v607_v8 = vsel %vm325_vm2, %v601_v37, %v603_v20  ;;  %v595_v22 = vmul.f32 %v1120_v26, %v591_v36  ;;  %v574_v37 = vsel %vm281_vm4, %v571_v23, %v573_v12 }
 0x314   :  { %v545_v51 = vsel %vm237_vm6, %v541_v2, %v535_v56  ;;  %v611_v59 = vmul.f32 %v1100_v18, %v607_v8  ;;  %v612_v17 = vmul.f32 %v1105_v19, %v606_v29  ;;  %v579_v18 = vmul.f32 %v1138_v34, %v575_v15 }
 0x315   :  { %v546_v46 = vmul.f32 %v1238_v24, %v545_v51  ;;  %v558_v24 = vsel %vm259_vm5, %v555_v43, %v557_v11  ;;  %v580_v19 = vmul.f32 %v1143_v35, %v574_v37  ;;  %v563_v26 = vmul.f32 %v1154_v41, %v559_v38 }
 0x316   :  { %644 = vmatpush.msra.mxu1 %v611_v59  ;;  %664 = vmatpush.msra.mxu2 %v612_v17  ;;  %v564_v28 = vmul.f32 %v1159_v42, %v558_v24  ;;  %v526_v61 = vsel %vm215_vm9, %v523_v32, %v1434_v5  ;;  %v544_v34 = vsel %vm237_vm6, %v535_v56, %v1402_v4 }
 0x317   :  { %629 = vmatpush.msra.mxu0 %v546_v46  ;;  %v527_v42 = vsel %vm215_vm9, %v1421_v60, %v523_v32  ;;  %v533_v39 = vmul.f32 %v1194_v1, %v526_v61  ;;  %v547_v0 = vmul.f32 %v1243_v25, %v544_v34 }
 0x318   :  { %645 = vmatpush.msra.mxu1 %v595_v22  ;;  %665 = vmatpush.msra.mxu2 %v596_v21 }
 0x31a   :  { %v507_v14 = vpop.permute.xlu1 %506  ;;  %646 = vmatpush.msra.mxu1 %v579_v18  ;;  %v539_v23 = vpop.permute.xlu0 %538  ;;  %666 = vmatpush.msra.mxu2 %v580_v19 }
 0x31b   :  { %v542_v35 = vsel %vm237_vm6, %v539_v23, %v541_v2  ;;  %v543_v41 = vsel %vm237_vm6, %v1402_v4, %v539_v23  ;;  %v532_v4 = vmul.f32 %v1189_v63, %v527_v42  ;;  %v485_v63 = vld [vmem:[%s1556_s4] sm:$0xff]  ;;  %v487_v57 = vpop.permute.xlu2 %486 }
 0x31c   :  { %v549_v43 = vmul.f32 %v1167_v47, %v542_v35  ;;  %647 = vmatpush.msra.mxu1 %v563_v26  ;;  %667 = vmatpush.msra.mxu2 %v564_v28  ;;  %v548_v12 = vmul.f32 %v1179_v58, %v543_v41  ;;  %v511_v47 = vsel %vm193_vm7, %v1400_v49, %v507_v14 }
 0x31d   :  { %v516_v25 = vmul.f32 %v1210_v7, %v511_v47  ;;  %v496_v33 = vsel %vm172_vm8, %v487_v57, %v1404_v6 }
 0x31e   :  { %648 = vmatpush.msra.mxu1 %v1328_v52  ;;  %689 = vmatpush.msra.mxu3 %v549_v43  ;;  %v499_v20 = vmul.f32 %v496_v33, %v1308_v3 }
 0x31f   :  { %668 = vmatpush.msra.mxu2 %v1358_v27 }
 0x320   :  { %649 = vmatpush.msra.mxu1 %v547_v0  ;;  %690 = vmatpush.msra.mxu3 %v533_v39 }
 0x321   :  { %669 = vmatpush.msra.mxu2 %v548_v12 }
 0x322   :  { %v491_v62 = vpop.permute.xlu1 %490  ;;  %v509_v1 = vpop.permute.xlu0 %508 }
 0x323   :  { %v495_v52 = vsel %vm172_vm8, %v1404_v6, %v491_v62  ;;  %670 = vmatpush.msra.mxu2 %v532_v4  ;;  %v510_v58 = vsel %vm193_vm7, %v507_v14, %v509_v1 }
 0x324   :  { %v500_v27 = vmul.f32 %v495_v52, %v1227_v16  ;;  %v517_v2 = vmul.f32 %v1215_v9, %v510_v58 }
 0x325   :  { %671 = vmatpush.msra.mxu2 %v516_v25 }
 0x326   :  { %691 = vmatpush.msra.mxu3 %v517_v2 }
 0x327   :  { %672 = vmatpush.msra.mxu2 %v500_v27 }
 0x328   :  { %808 = vmatmul.msk.f32.vlgmr.msra.gmra.mxu2 %vm339_vm10, %v485_v63 }
 0x32a   :  { %v519_v7 = vpop.permute.xlu1 %518  ;;  %v493_v50 = vpop.permute.xlu0 %492 }
 0x32b   :  { %v528_v11 = vsel %vm215_vm9, %v519_v7, %v1421_v60  ;;  %v529_v16 = vsel %vm215_vm9, %v1434_v5, %v519_v7  ;;  %v494_v9 = vsel %vm172_vm8, %v491_v62, %v493_v50  ;;  %v497_v10 = vsel %vm172_vm8, %v493_v50, %v487_v57 }
 0x32c   :  { %v530_v44 = vmul.f32 %v1262_v40, %v529_v16  ;;  %v531_v54 = vmul.f32 %v1274_v45, %v528_v11  ;;  %v501_v32 = vmul.f32 %v494_v9, %v1248_v30  ;;  %v498_v36 = vmul.f32 %v497_v10, %v1303_v31 }
 0x32e   :  { %630 = vmatpush.msra.mxu0 %v530_v44  ;;  %650 = vmatpush.msra.mxu1 %v531_v54 }
 0x32f   :  { %692 = vmatpush.msra.mxu3 %v501_v32 }
 0x330   :  { %809 = vmatmul.msk.f32.vlgmr.msra.gmra.mxu3 %vm339_vm10, %v485_v63 }
 0x332   :  { %v503_v60 = vpop.permute.xlu0 %502 }
 0x333   :  { %v512_v40 = vsel %vm193_vm7, %v503_v60, %v1400_v49  ;;  %v513_v30 = vsel %vm193_vm7, %v509_v1, %v503_v60 }
 0x334   :  { %v514_v45 = vmul.f32 %v1283_v53, %v513_v30  ;;  %v515_v5 = vmul.f32 %v1288_v55, %v512_v40 }
 0x336   :  { %631 = vmatpush.msra.mxu0 %v514_v45  ;;  %651 = vmatpush.msra.mxu1 %v515_v5 }
 0x338   :  { %632 = vmatpush.msra.mxu0 %v498_v36  ;;  %652 = vmatpush.msra.mxu1 %v499_v20 }
 0x339   :  { %806 = vmatmul.msk.f32.vlgmr.msra.gmra.mxu0 %vm339_vm10, %v485_v63  ;;  %807 = vmatmul.msk.f32.vlgmr.msra.gmra.mxu1 %vm339_vm10, %v485_v63 }
 0x3ab   :  { %v1527_v49 = vpop.f32.mrf.mxu2 }
 0x3ac   :  { %v731_v29 = vmul.f32 %v1527_v49, %v1527_v49 }
 0x3b3   :  { %v1529_v48 = vpop.f32.mrf.mxu3 }
 0x3b4   :  { %v728_v53 = vadd.f32 %v1529_v48, %v1527_v49  ;;  %v732_v8 = vmul.f32 %v1529_v48, %v1529_v48 }
 0x3b6   :  { %729 = vadd.xlane.f32.xlu0 %v728_v53  ;;  %v634_v55 = vpop.f32.mrf.mxu0  ;;  %v654_v3 = vpop.f32.mrf.mxu1  ;;  %v733_v51 = vadd.f32 %v732_v8, %v731_v29 }
 0x3b7   :  { %v700_v6 = vmul.f32 %v634_v55, %v634_v55  ;;  %v701_v31 = vmul.f32 %v654_v3, %v654_v3  ;;  %v697_v56 = vadd.f32 %v654_v3, %v634_v55 }
 0x3b9   :  { %698 = vadd.xlane.f32.xlu1 %v697_v56  ;;  %v702_v13 = vadd.f32 %v701_v31, %v700_v6 }
 0x3bb   :  { %703 = vadd.xlane.f32.xlu2 %v702_v13 }
 0x3c1   :  { %734 = vadd.xlane.f32.xlu1 %v733_v51 }
 0x429   :  { %v730_v46 = vpop.xlane.xlu0 %729 }
 0x42a   :  { %v736_v21 = vmul.f32 0.00390625, %v730_v46 }
 0x42c   :  { %v699_v59 = vpop.xlane.xlu1 %698  ;;  %v738_v24 = vmul.f32 %v736_v21, %v736_v21  ;;  %v751_v63 = vsub.f32 %v1527_v49, %v736_v21  ;;  %v752_v7 = vsub.f32 %v1529_v48, %v736_v21 }
 0x42d   :  { %v705_v15 = vmul.f32 0.00390625, %v699_v59 }
 0x42e   :  { %v704_v17 = vpop.xlane.xlu2 %703 }
 0x42f   :  { %v706_v22 = vmul.f32 0.00390625, %v704_v17  ;;  %v707_v37 = vmul.f32 %v705_v15, %v705_v15  ;;  %v720_v12 = vsub.f32 %v634_v55, %v705_v15  ;;  %v721_v47 = vsub.f32 %v654_v3, %v705_v15 }
 0x431   :  { %v708_v38 = vsub.f32 %v706_v22, %v707_v37 }
 0x433   :  { %v709_v18 = vadd.f32 1e-05, %v708_v38 }
 0x434   :  { %v735_v19 = vpop.xlane.xlu1 %734 }
 0x435   :  { %824 = vrsqrt.f32 %v709_v18  ;;  %v737_v26 = vmul.f32 0.00390625, %v735_v19  ;;  %vm716_vm2 = vweird.f32 %v709_v18 }
 0x437   :  { %v739_v14 = vsub.f32 %v737_v26, %v738_v24 }
 0x439   :  { %v740_v23 = vadd.f32 1e-05, %v739_v14 }
 0x43b   :  { %v825_v28 = vpop.eup %824  ;;  %826 = vrsqrt.f32 %v740_v23  ;;  %vm747_vm5 = vweird.f32 %v740_v23 }
 0x43c   :  { %v711_v61 = vmul.f32 %v825_v28, %v709_v18  ;;  %vm717_vm1 = vweird.f32 %v825_v28 }
 0x43d   :  { %vm718_vm3 = vmor %vm716_vm2, %vm717_vm1 }
 0x43e   :  { %v712_v34 = vmul.f32 %v825_v28, %v711_v61 }
 0x440   :  { %v713_v35 = vmul.f32 0.5, %v712_v34 }
 0x441   :  { %v827_v41 = vpop.eup %826 }
 0x442   :  { %v714_v43 = vsub.f32 1.5, %v713_v35  ;;  %v742_v42 = vmul.f32 %v827_v41, %v740_v23  ;;  %vm748_vm4 = vweird.f32 %v827_v41 }
 0x443   :  { %vm749_vm6 = vmor %vm747_vm5, %vm748_vm4 }
 0x444   :  { %v715_v39 = vmul.f32 %v825_v28, %v714_v43  ;;  %v743_v0 = vmul.f32 %v827_v41, %v742_v42 }
 0x446   :  { %v719_v4 = vsel %vm718_vm3, %v825_v28, %v715_v39  ;;  %v744_v62 = vmul.f32 0.5, %v743_v0 }
 0x447   :  { %v722_v1 = vmul.f32 %v720_v12, %v719_v4  ;;  %v723_v25 = vmul.f32 %v721_v47, %v719_v4 }
 0x448   :  { %v745_v52 = vsub.f32 1.5, %v744_v62 }
 0x449   :  { %v724_v58 = vmax.f32 %v722_v1, 0.0  ;;  %v725_v27 = vmax.f32 %v723_v25, 0.0 }
 0x44a   :  { %v746_v2 = vmul.f32 %v827_v41, %v745_v52 }
 0x44b   :  { %v726_v50 = vmin.f32 %v724_v58, 6.0  ;;  %v727_v11 = vmin.f32 %v725_v27, 6.0 }
 0x44c   :  { %v750_v16 = vsel %vm749_vm6, %v827_v41, %v746_v2 }
 0x44d   :  { %759 = vst [vmem:[%s1557_s6] sm:$0xff] %v726_v50  ;;  %v753_v9 = vmul.f32 %v751_v63, %v750_v16  ;;  %v754_v44 = vmul.f32 %v752_v7, %v750_v16 }
 0x44e   :  { %760 = vst [vmem:[%s1557_s6 + $0x8] sm:$0xff] %v727_v11 }
 0x44f   :  { %v755_v54 = vmax.f32 %v753_v9, 0.0  ;;  %v756_v32 = vmax.f32 %v754_v44, 0.0 }
 0x451   :  { %v757_v57 = vmin.f32 %v755_v54, 6.0  ;;  %v758_v60 = vmin.f32 %v756_v32, 6.0 }
 0x453   :  { %810 = vst [vmem:[%s1557_s6 + $0x10] sm:$0xff] %v757_v57 }
 0x454   :  { %811 = vst [vmem:[%s1557_s6 + $0x18] sm:$0xff] %v758_v60 }

</bundles_post_ra>
